<compile_context>
chip_gen: v5e
topology: v5e:2x2
jax: 0.10.0
libtpu: 0.0.40
codegen_flags: <defaults>
</compile_context>

<pallas_src>
import functools

import jax
import jax.numpy as jnp
from jax.experimental import pallas as pl
from jax.experimental.pallas import tpu as pltpu

LANE = 128


def _round_up(x, m):
    return (x + m - 1) // m * m


def dqn_kernel(x_ref, w1_ref, b1_ref, w2_ref, b2_ref, w3_ref, b3_ref, o_ref):
    # x_ref: (tm, n_obs) f32   w1: (n_obs, H) f32   w2: (H, H) bf16
    # w3: (H, N_pad) bf16      b1/b2: (1, H) f32    b3: (1, n_actions) f32
    # o_ref: (tm, n_actions) f32
    n_actions = o_ref.shape[1]
    x = x_ref[...]

    # ---- Layer 1: single f32 MXU pass over the tiny contraction dim (K = n_obs).
    # The MXU has plenty of slack (only two 128-K passes per tile elsewhere), and
    # this keeps the v5e VPU/XLU free of lane-broadcast FMA work.
    h1 = jnp.dot(x, w1_ref[...], preferred_element_type=jnp.float32) + b1_ref[...]
    h1 = jnp.maximum(h1, 0.0)

    # ---- Layer 2: bf16 operands, f32 accumulation on the MXU; bias/ReLU in f32.
    h2 = jnp.dot(h1.astype(jnp.bfloat16), w2_ref[...],
                 preferred_element_type=jnp.float32)
    h2 = jnp.maximum(h2 + b2_ref[...], 0.0)

    # ---- Layer 3: matmul against the lane-dense (128-wide, zero-padded) w3 slab
    # in VMEM, then store ONLY the n_actions useful columns -> narrow writeback.
    out = jnp.dot(h2.astype(jnp.bfloat16), w3_ref[...],
                  preferred_element_type=jnp.float32)
    o_ref[...] = (out[:, :n_actions] + b3_ref[...]).astype(o_ref.dtype)


@functools.partial(jax.jit, static_argnames=("block_m",))
def dqn_forward(x, w1, b1, w2, b2, w3, b3, *, block_m=2048):
    B, n_obs = x.shape
    H = w1.shape[1]
    n_actions = w3.shape[1]

    # ---- Batch tiling: near-equal 8-aligned tiles (pad waste < 8 rows per tile).
    # Keep >= 2 grid steps (an even count) whenever possible so the "parallel"
    # batch axis shards across both TensorCores on v7x.
    B8 = _round_up(B, 8)
    n_tiles = pl.cdiv(B8, block_m)
    if B8 >= 16:
        n_tiles = max(n_tiles, 2)
        n_tiles = 2 * pl.cdiv(n_tiles, 2)
    tm = _round_up(pl.cdiv(B8, n_tiles), 8)
    grid_m = pl.cdiv(B8, tm)
    B_pad = tm * grid_m

    x = x.astype(jnp.float32)
    if B_pad != B:                      # skip the pad copy in the aligned case
        x = jnp.pad(x, ((0, B_pad - B), (0, 0)))

    # Weight dtypes: layer-1 stays f32 (matches reference exactly); layers 2/3
    # feed the MXU as bf16.  w3 is padded to a full 128-lane slab once (tiny,
    # never written back to HBM).
    w1 = w1.astype(jnp.float32)
    b1 = b1.astype(jnp.float32)
    w2 = w2.astype(jnp.bfloat16)
    b2 = b2.astype(jnp.float32)
    n_pad = _round_up(max(n_actions, 1), LANE)
    w3p = jnp.pad(w3, ((0, 0), (0, n_pad - n_actions))).astype(jnp.bfloat16)
    b3 = b3.astype(jnp.float32)

    # Constant (0, 0) index_map keeps ~66 KiB of weights VMEM-resident (no
    # per-step re-fetch); double-buffering them is harmless since VMEM is ample.
    resident = lambda shp: pl.BlockSpec(shp, lambda i: (0, 0))

    cost = pl.CostEstimate(
        flops=2 * B_pad * (n_obs * H + H * H + H * n_pad),
        transcendentals=0,
        bytes_accessed=(B_pad * n_obs * 4 + B_pad * n_actions * 4
                        + (n_obs * H + 2 * H) * 4
                        + (H * H + H * n_pad) * 2 + n_actions * 4),
    )

    out = pl.pallas_call(
        dqn_kernel,
        out_shape=jax.ShapeDtypeStruct((B_pad, n_actions), jnp.float32),
        grid_spec=pltpu.PrefetchScalarGridSpec(
            num_scalar_prefetch=0,
            grid=(grid_m,),
            in_specs=[
                pl.BlockSpec((tm, n_obs), lambda i: (i, 0)),   # x streams per tile
                resident(w1.shape), resident(b1.shape),
                resident(w2.shape), resident(b2.shape),
                resident(w3p.shape), resident(b3.shape),
            ],
            out_specs=pl.BlockSpec((tm, n_actions), lambda i: (i, 0)),
        ),
        compiler_params=pltpu.CompilerParams(
            dimension_semantics=("parallel",),  # v7x: shard batch tiles over 2 TCs
        ),
        cost_estimate=cost,
    )(x, w1, b1, w2, b2, w3p, b3)

    return out if B_pad == B else out[:B]


def init_params(key, n_observations, n_actions, hidden=128):
    # Deterministic init mimicking PyTorch nn.Linear default:
    # U(-1/sqrt(fan_in), 1/sqrt(fan_in)) for both weight and bias.
    ks = jax.random.split(key, 6)

    def lin(kw, kb, fan_in, fan_out):
        bound = 1.0 / jnp.sqrt(fan_in)
        w = jax.random.uniform(kw, (fan_in, fan_out), jnp.float32, -bound, bound)
        b = jax.random.uniform(kb, (1, fan_out), jnp.float32, -bound, bound)
        return w, b

    w1, b1 = lin(ks[0], ks[1], n_observations, hidden)
    w2, b2 = lin(ks[2], ks[3], hidden, hidden)
    w3, b3 = lin(ks[4], ks[5], hidden, n_actions)
    return w1, b1, w2, b2, w3, b3


def dqn_reference(x, w1, b1, w2, b2, w3, b3):
    # Mirrors the kernel's numerics (f32 layer 1; bf16 MXU operands, f32 acc for
    # layers 2/3).
    h1 = jnp.maximum(jnp.dot(x, w1, preferred_element_type=jnp.float32) + b1, 0.0)
    h2 = jnp.maximum(
        jnp.dot(h1.astype(jnp.bfloat16), w2.astype(jnp.bfloat16),
                preferred_element_type=jnp.float32) + b2, 0.0)
    return jnp.dot(h2.astype(jnp.bfloat16), w3.astype(jnp.bfloat16),
                   preferred_element_type=jnp.float32) + b3


if __name__ == "__main__":
    key = jax.random.PRNGKey(0)
    n_observations, n_actions, batch = 4, 2, 8

    kx, kp, kx2 = jax.random.split(key, 3)
    x = jax.random.normal(kx, (batch, n_observations), jnp.float32)
    params = init_params(kp, n_observations, n_actions)

    # Small batch (single grid step).
    out = jax.block_until_ready(dqn_forward(x, *params))
    ref = dqn_reference(x, *params)
    assert out.shape == (batch, n_actions)
    assert jnp.allclose(out, ref, atol=1e-2, rtol=1e-2), "mismatch vs reference (B=8)"

    # Larger, non-multiple batch exercising the multi-step pipelined grid,
    # near-equal tile selection, and batch padding.
    xb = jax.random.normal(kx2, (300, n_observations), jnp.float32)
    outb = jax.block_until_ready(dqn_forward(xb, *params, block_m=128))
    refb = dqn_reference(xb, *params)
    assert outb.shape == (300, n_actions)
    assert jnp.allclose(outb, refb, atol=1e-2, rtol=1e-2), "mismatch vs reference (B=300)"

    print("KERNEL_OK")
</pallas_src>

<mosaic_0001>
module attributes {stable_mosaic.version = 11 : i64} {
  func.func @dqn_kernel(%arg0: i32, %arg1: memref<8x4xf32, #tpu.memory_space<vmem>>, %arg2: memref<4x128xf32, #tpu.memory_space<vmem>>, %arg3: memref<1x128xf32, #tpu.memory_space<vmem>>, %arg4: memref<128x128xbf16, #tpu.memory_space<vmem>>, %arg5: memref<1x128xf32, #tpu.memory_space<vmem>>, %arg6: memref<128x128xbf16, #tpu.memory_space<vmem>>, %arg7: memref<1x2xf32, #tpu.memory_space<vmem>>, %arg8: memref<8x2xf32, #tpu.memory_space<vmem>>) attributes {dimension_semantics = [#tpu.dimension_semantics<parallel>], iteration_bounds = array<i64: 1>, scalar_prefetch = 0 : i64, scratch_operands = 0 : i64, tpu.core_type = #tpu.core_type<tc>, window_params = [{transform_indices = @transform_0, window_bounds = array<i64: 8, 4>}, {pipeline_mode = #tpu.pipeline_mode<synchronous>, transform_indices = @transform_1, window_bounds = array<i64: 4, 128>}, {pipeline_mode = #tpu.pipeline_mode<synchronous>, transform_indices = @transform_2, window_bounds = array<i64: 1, 128>}, {pipeline_mode = #tpu.pipeline_mode<synchronous>, transform_indices = @transform_3, window_bounds = array<i64: 128, 128>}, {pipeline_mode = #tpu.pipeline_mode<synchronous>, transform_indices = @transform_4, window_bounds = array<i64: 1, 128>}, {pipeline_mode = #tpu.pipeline_mode<synchronous>, transform_indices = @transform_5, window_bounds = array<i64: 128, 128>}, {pipeline_mode = #tpu.pipeline_mode<synchronous>, transform_indices = @transform_6, window_bounds = array<i64: 1, 2>}, {transform_indices = @transform_7, window_bounds = array<i64: 8, 2>}]} {
    %c0 = arith.constant 0 : index
    %c0_0 = arith.constant 0 : index
    %0 = vector.load %arg1[%c0, %c0_0] : memref<8x4xf32, #tpu.memory_space<vmem>>, vector<8x4xf32>
    %c0_1 = arith.constant 0 : index
    %c0_2 = arith.constant 0 : index
    %1 = vector.load %arg2[%c0_1, %c0_2] : memref<4x128xf32, #tpu.memory_space<vmem>>, vector<4x128xf32>
    %cst = arith.constant dense<0.000000e+00> : vector<8x128xf32>
    %2 = tpu.matmul %0, %1, %cst {dimension_numbers = #tpu.dot_dimension_numbers<[1], [0], [0], [1], [0, 0, 1, 1], [], []>} : vector<8x4xf32>, vector<4x128xf32>, vector<8x128xf32> -> vector<8x128xf32>
    %c0_3 = arith.constant 0 : index
    %c0_4 = arith.constant 0 : index
    %3 = vector.load %arg3[%c0_3, %c0_4] : memref<1x128xf32, #tpu.memory_space<vmem>>, vector<1x128xf32>
    %4 = vector.broadcast %3 : vector<1x128xf32> to vector<8x128xf32>
    %5 = arith.addf %2, %4 : vector<8x128xf32>
    %cst_5 = arith.constant 0.000000e+00 : f32
    %6 = vector.broadcast %cst_5 : f32 to vector<8x128xf32>
    %7 = arith.maximumf %5, %6 : vector<8x128xf32>
    %8 = arith.truncf %7 : vector<8x128xf32> to vector<8x128xbf16>
    %c0_6 = arith.constant 0 : index
    %c0_7 = arith.constant 0 : index
    %9 = vector.load %arg4[%c0_6, %c0_7] : memref<128x128xbf16, #tpu.memory_space<vmem>>, vector<128x128xbf16>
    %cst_8 = arith.constant dense<0.000000e+00> : vector<8x128xf32>
    %10 = tpu.matmul %8, %9, %cst_8 {dimension_numbers = #tpu.dot_dimension_numbers<[1], [0], [0], [1], [0, 0, 1, 1], [], []>} : vector<8x128xbf16>, vector<128x128xbf16>, vector<8x128xf32> -> vector<8x128xf32>
    %c0_9 = arith.constant 0 : index
    %c0_10 = arith.constant 0 : index
    %11 = vector.load %arg5[%c0_9, %c0_10] : memref<1x128xf32, #tpu.memory_space<vmem>>, vector<1x128xf32>
    %12 = vector.broadcast %11 : vector<1x128xf32> to vector<8x128xf32>
    %13 = arith.addf %10, %12 : vector<8x128xf32>
    %cst_11 = arith.constant 0.000000e+00 : f32
    %14 = vector.broadcast %cst_11 : f32 to vector<8x128xf32>
    %15 = arith.maximumf %13, %14 : vector<8x128xf32>
    %16 = arith.truncf %15 : vector<8x128xf32> to vector<8x128xbf16>
    %c0_12 = arith.constant 0 : index
    %c0_13 = arith.constant 0 : index
    %17 = vector.load %arg6[%c0_12, %c0_13] : memref<128x128xbf16, #tpu.memory_space<vmem>>, vector<128x128xbf16>
    %cst_14 = arith.constant dense<0.000000e+00> : vector<8x128xf32>
    %18 = tpu.matmul %16, %17, %cst_14 {dimension_numbers = #tpu.dot_dimension_numbers<[1], [0], [0], [1], [0, 0, 1, 1], [], []>} : vector<8x128xbf16>, vector<128x128xbf16>, vector<8x128xf32> -> vector<8x128xf32>
    %19 = vector.extract_strided_slice %18 {offsets = [0, 0], sizes = [8, 2], strides = [1, 1]} : vector<8x128xf32> to vector<8x2xf32>
    %c0_15 = arith.constant 0 : index
    %c0_16 = arith.constant 0 : index
    %20 = vector.load %arg7[%c0_15, %c0_16] : memref<1x2xf32, #tpu.memory_space<vmem>>, vector<1x2xf32>
    %21 = vector.broadcast %20 : vector<1x2xf32> to vector<8x2xf32>
    %22 = arith.addf %19, %21 : vector<8x2xf32>
    %c0_17 = arith.constant 0 : index
    %c0_18 = arith.constant 0 : index
    %23 = vector.load %arg8[%c0_17, %c0_18] : memref<8x2xf32, #tpu.memory_space<vmem>>, vector<8x2xf32>
    tpu.vector_store %arg8[%c0_17, %c0_18], %22 {strides = array<i32>} : memref<8x2xf32, #tpu.memory_space<vmem>>, vector<8x2xf32>,
    return
  }
  func.func @transform_0(%arg0: i32) -> (i32, i32) {
    %c0_i32 = arith.constant 0 : i32
    %c0_i32_0 = arith.constant 0 : i32
    return %arg0, %c0_i32 : i32, i32
  }
  func.func @transform_1(%arg0: i32) -> (i32, i32) {
    %c0_i32 = arith.constant 0 : i32
    %c0_i32_0 = arith.constant 0 : i32
    %c0_i32_1 = arith.constant 0 : i32
    return %c0_i32, %c0_i32_0 : i32, i32
  }
  func.func @transform_2(%arg0: i32) -> (i32, i32) {
    %c0_i32 = arith.constant 0 : i32
    %c0_i32_0 = arith.constant 0 : i32
    %c0_i32_1 = arith.constant 0 : i32
    return %c0_i32, %c0_i32_0 : i32, i32
  }
  func.func @transform_3(%arg0: i32) -> (i32, i32) {
    %c0_i32 = arith.constant 0 : i32
    %c0_i32_0 = arith.constant 0 : i32
    %c0_i32_1 = arith.constant 0 : i32
    return %c0_i32, %c0_i32_0 : i32, i32
  }
  func.func @transform_4(%arg0: i32) -> (i32, i32) {
    %c0_i32 = arith.constant 0 : i32
    %c0_i32_0 = arith.constant 0 : i32
    %c0_i32_1 = arith.constant 0 : i32
    return %c0_i32, %c0_i32_0 : i32, i32
  }
  func.func @transform_5(%arg0: i32) -> (i32, i32) {
    %c0_i32 = arith.constant 0 : i32
    %c0_i32_0 = arith.constant 0 : i32
    %c0_i32_1 = arith.constant 0 : i32
    return %c0_i32, %c0_i32_0 : i32, i32
  }
  func.func @transform_6(%arg0: i32) -> (i32, i32) {
    %c0_i32 = arith.constant 0 : i32
    %c0_i32_0 = arith.constant 0 : i32
    %c0_i32_1 = arith.constant 0 : i32
    return %c0_i32, %c0_i32_0 : i32, i32
  }
  func.func @transform_7(%arg0: i32) -> (i32, i32) {
    %c0_i32 = arith.constant 0 : i32
    %c0_i32_0 = arith.constant 0 : i32
    return %arg0, %c0_i32 : i32, i32
  }
}

</mosaic_0001>

<bundles_post_ra>
// kernel: dqn_forward.1
= control target key start
LH: loop header
LB: loop body
LE: loop exit
PB: predicated region body
PF: predicated region fallthrough
CT: control target
= control target key end

     0   :  { %vm36_vm0 = vcmask 1043456   ;;  %vm32_vm1 = vcmask 31744   ;;  %vm227_vm2 = vcmask 15360   ;;  %s424_s1 = inlined_call_operand.vmem [shape: f32[4,128], index: 1, kind: input, shape index: {}]   ;;  %s425_s0 = inlined_call_operand.vmem [shape: f32[8,4], index: 0, kind: input, shape index: {}]   ;;  %s426_s3 = inlined_call_operand.vmem [shape: bf16[128,128], index: 3, kind: input, shape index: {}]   ;;  %s427_s2 = inlined_call_operand.vmem [shape: f32[1,128], index: 2, kind: input, shape index: {}]   ;;  %s428_s4 = inlined_call_operand.vmem [shape: f32[1,128], index: 4, kind: input, shape index: {}]   ;;  %s429_s5 = inlined_call_operand.vmem [shape: bf16[128,128], index: 5, kind: input, shape index: {}]   ;;  %s430_s6 = inlined_call_operand.vmem [shape: f32[1,2], index: 6, kind: input, shape index: {}]   ;;  %s431_s7 = inlined_call_operand.vmem [shape: f32[8,2], index: 7, kind: output, shape index: {}]  }
   0x1   :  { %v27_v0 = vld [vmem:[%s424_s1] sm:$0xf]  ;;  %v306_v2 = vld [vmem:[%s426_s3 + $0x38] sm:$0xff]  ;;  %v305_v3 = vld [vmem:[%s426_s3 + $0x30] sm:$0xff] }
   0x2   :  { %v26_v1 = vld [vmem:[%s425_s0] sm:$0xff]  ;;  %233 = vmatpush.msk.msra.mxu0 %vm36_vm0, %v27_v0  ;;  %130 = vmatpush.bf16.msra.mxu1 %v306_v2  ;;  %v304_v4 = vld [vmem:[%s426_s3 + $0x28] sm:$0xff]  ;;  %v302_v6 = vld [vmem:[%s426_s3 + $0x18] sm:$0xff] }
   0x3   :  { %234 = vmatmul.msk.f32.vlgmr.msra.gmra.mxu0 %vm32_vm1, %v26_v1  ;;  %v303_v5 = vld [vmem:[%s426_s3 + $0x20] sm:$0xff]  ;;  %v301_v7 = vld [vmem:[%s426_s3 + $0x10] sm:$0xff]  ;;  %v300_v8 = vld [vmem:[%s426_s3 + $0x8] sm:$0xff] }
   0x4   :  { %v299_v9 = vld [vmem:[%s426_s3] sm:$0xff]  ;;  %v314_v10 = vld [vmem:[%s429_s5 + $0x38] sm:$0xff]  ;;  %v313_v11 = vld [vmem:[%s429_s5 + $0x30] sm:$0xff] }
   0x5   :  { %209 = vmatpush.bf16.msra.mxu2 %v314_v10  ;;  %v312_v12 = vld [vmem:[%s429_s5 + $0x28] sm:$0xff]  ;;  %v311_v13 = vld [vmem:[%s429_s5 + $0x20] sm:$0xff]  ;;  %v310_v14 = vld [vmem:[%s429_s5 + $0x18] sm:$0xff] }
   0x6   :  { %131 = vmatpush.bf16.msra.mxu1 %v305_v3  ;;  %v309_v15 = vld [vmem:[%s429_s5 + $0x10] sm:$0xff]  ;;  %v315_v16 = vld [vmem:[%s427_s2] ss:$0 sm:$0xff]  ;;  %v308_v21 = vld [vmem:[%s429_s5 + $0x8] sm:$0xff] }
   0x7   :  { %v307_v22 = vld [vmem:[%s429_s5] sm:$0xff] }
   0x8   :  { %v316_v23 = vld [vmem:[%s428_s4] ss:$0 sm:$0xff] }
   0x9   :  { %210 = vmatpush.bf16.msra.mxu2 %v313_v11  ;;  %v317_v29 = vld [vmem:[%s430_s6] ss:$0 sm:$0xff] }
   0xa   :  { %132 = vmatpush.bf16.msra.mxu1 %v304_v4 }
   0xd   :  { %211 = vmatpush.bf16.msra.mxu2 %v312_v12 }
   0xe   :  { %133 = vmatpush.bf16.msra.mxu1 %v303_v5 }
  0x11   :  { %212 = vmatpush.bf16.msra.mxu2 %v311_v13 }
  0x12   :  { %134 = vmatpush.bf16.msra.mxu1 %v302_v6 }
  0x15   :  { %213 = vmatpush.bf16.msra.mxu2 %v310_v14 }
  0x16   :  { %135 = vmatpush.bf16.msra.mxu1 %v301_v7 }
  0x19   :  { %214 = vmatpush.bf16.msra.mxu2 %v309_v15 }
  0x1a   :  { %136 = vmatpush.bf16.msra.mxu1 %v300_v8 }
  0x1d   :  { %215 = vmatpush.bf16.msra.mxu2 %v308_v21 }
  0x1e   :  { %137 = vmatpush.bf16.msra.mxu1 %v299_v9 }
  0x21   :  { %216 = vmatpush.bf16.msra.mxu2 %v307_v22 }
  0x80   :  { %v57_v17 = vpop.f32.mrf.mxu0 }
  0x81   :  { %v58_v18 = vadd.f32 %v315_v16, %v57_v17 }
  0x83   :  { %v60_v19 = vmax.f32 %v58_v18, 0.0 }
  0x85   :  { %v61_v20 = vpack.c.bf16 %v60_v19, %v60_v19 }
  0x87   :  { %138 = vmatmul.bf16.vlgmr.msra.gmra.mxu1 %v61_v20 }
 0x104   :  { %v139_v24 = vpop.f32.mrf.mxu1 }
 0x105   :  { %v140_v25 = vadd.f32 %v316_v23, %v139_v24 }
 0x107   :  { %v143_v26 = vmax.f32 %v140_v25, 0.0 }
 0x109   :  { %v144_v27 = vpack.c.bf16 %v143_v26, %v143_v26 }
 0x10b   :  { %217 = vmatmul.bf16.vlgmr.msra.gmra.mxu2 %v144_v27 }
 0x10c   :  { %v141_v28 = vpop.f32.mrf.mxu1 }
 0x18e   :  { %v218_v30 = vpop.f32.mrf.mxu2 }
 0x18f   :  { %v226_v31 = vadd.f32 %v317_v29, %v218_v30 }
 0x191   :  { %228 = vst.msk [vmem:[%s431_s7] sm:$0xff] %vm227_vm2, %v226_v31 }
 0x196   :  { %v220_v32 = vpop.f32.mrf.mxu2 }

</bundles_post_ra>
